<compile_context>
chip_gen: v6e
topology: v6e:2x2x1
jax: 0.10.0
libtpu: 0.0.40
codegen_flags: <defaults>
</compile_context>

<pallas_src>
import functools

import jax
import jax.numpy as jnp
from jax.experimental import pallas as pl
from jax.experimental.pallas import tpu as pltpu


def _encoder_kernel(x_ref,
                    w1_ref, p1_ref, w2_ref, p2_ref, w3_ref, p3_ref,
                    o_ref,
                    h0_scr, h1_scr, h2_scr,
                    *, K, padding):
    """Fused 3x(Conv1d + BN(inference) + ReLU) for one sequence (grid step = batch element).

    x_ref  : (1, C0, L)       input sequence, f32 (channels on sublanes, L on lanes)
    w_ref  : (K, Cout, Cin)   conv weight, tap-major, bf16
    p_ref  : (Cout, 2)        folded BN params: [:, 0] = scale, [:, 1] = shift (f32)
    o_ref  : (1, C3, L)       output, f32
    h*_scr : (Cin_i, L + 2*padding) f32 VMEM scratch holding the zero-padded layer
             input, so every conv tap is an ordinary shifted read (no roll / concat).
    """
    L = x_ref.shape[-1]

    def conv_bn_relu(h, h_scr, w_ref, p_ref):
        cin = h_scr.shape[0]
        cout = w_ref.shape[1]
        # Zero halo columns, then drop the activation into the middle of the scratch.
        if padding > 0:
            zero_halo = jnp.zeros((cin, padding), h_scr.dtype)
            h_scr[:, 0:padding] = zero_halo
            h_scr[:, padding + L:2 * padding + L] = zero_halo
        h_scr[:, padding:padding + L] = h
        # K accumulated MXU dots (bf16 operands, f32 accumulate): y = sum_k W_k @ shift_k(h).
        acc = jnp.zeros((cout, L), jnp.float32)
        for k in range(K):                                   # static unroll, K = 3
            tap = h_scr[:, k:k + L].astype(jnp.bfloat16)     # shifted read, (Cin, L)
            acc = acc + jnp.dot(w_ref[k], tap, preferred_element_type=jnp.float32)
        # Folded conv-bias + BatchNorm (inference) + ReLU epilogue, all f32.
        y = acc * p_ref[:, 0:1] + p_ref[:, 1:2]
        return jnp.maximum(y, 0.0)

    h = x_ref[0]                                             # (C0, L) f32
    h = conv_bn_relu(h, h0_scr, w1_ref, p1_ref)
    h = conv_bn_relu(h, h1_scr, w2_ref, p2_ref)
    h = conv_bn_relu(h, h2_scr, w3_ref, p3_ref)
    o_ref[0] = h.astype(o_ref.dtype)


def make_block_params(key, cin, cout, ksize):
    """Deterministic Conv1d + BatchNorm1d (inference) parameters (PyTorch layouts)."""
    k1, k2, k3, k4, k5, k6 = jax.random.split(key, 6)
    w = jax.random.normal(k1, (cout, cin, ksize), jnp.float32) * 0.1   # (O, I, K)
    b = jax.random.normal(k2, (cout,), jnp.float32) * 0.1
    gamma = 1.0 + 0.1 * jax.random.normal(k3, (cout,), jnp.float32)
    beta = 0.1 * jax.random.normal(k4, (cout,), jnp.float32)
    running_mean = 0.1 * jax.random.normal(k5, (cout,), jnp.float32)
    running_var = jnp.abs(jax.random.normal(k6, (cout,), jnp.float32)) + 0.5
    return dict(w=w, b=b, gamma=gamma, beta=beta, mean=running_mean, var=running_var)


def fold_params(p, eps=1e-5):
    """Fold conv bias + inference BatchNorm into per-channel (scale, shift).

    Returns:
      w  : (K, Cout, Cin)  bf16, tap-major so w[k] is the (Cout, Cin) matrix for tap k.
      ss : (Cout, 2)       f32,  ss[:, 0] = scale, ss[:, 1] = shift.
    """
    w = jnp.transpose(p["w"], (2, 0, 1)).astype(jnp.bfloat16)          # (K, Cout, Cin)
    scale = p["gamma"] / jnp.sqrt(p["var"] + eps)                      # (Cout,)
    shift = p["beta"] + scale * (p["b"] - p["mean"])                   # (Cout,)
    return w, jnp.stack([scale, shift], axis=1).astype(jnp.float32)


def encoder_forward(x_ncl, params, *, stride, padding, eps=1e-5):
    """Full Encoder forward. x_ncl: (N, Cin, L) like PyTorch; returns (N, Cout3, L)."""
    # TODO(synk): stride > 1 / non-"same" padding would need a strided shifted-read pattern.
    assert stride == 1
    N, c0, L = x_ncl.shape
    K = params[0]["w"].shape[2]
    assert 2 * padding == K - 1, "kernel specialized to the 'same'-conv config"

    flat_args = []
    in_specs = [pl.BlockSpec((1, c0, L), lambda n: (n, 0, 0))]
    chans = [c0]
    for p in params:
        w, ss = fold_params(p, eps)
        flat_args += [w, ss]
        in_specs += [pl.BlockSpec(w.shape, lambda n: (0, 0, 0)),   # weights: VMEM residents
                     pl.BlockSpec(ss.shape, lambda n: (0, 0))]
        chans.append(w.shape[1])
    cout_last = chans[-1]

    kernel = functools.partial(_encoder_kernel, K=K, padding=padding)
    return pl.pallas_call(
        kernel,
        out_shape=jax.ShapeDtypeStruct((N, cout_last, L), jnp.float32),
        grid=(N,),                                   # one whole sequence per grid step
        in_specs=in_specs,
        out_specs=pl.BlockSpec((1, cout_last, L), lambda n: (n, 0, 0)),
        scratch_shapes=[pltpu.VMEM((c, L + 2 * padding), jnp.float32) for c in chans[:3]],
        compiler_params=pltpu.CompilerParams(
            dimension_semantics=("parallel",),       # megacore sharding on v7x
            vmem_limit_bytes=32 * 1024 * 1024,
        ),
    )(x_ncl, *flat_args)


# ------------------------- pure-JAX reference ---------------------------------
def ref_block(x_ncl, p, *, stride, padding, eps=1e-5):
    y = jax.lax.conv_general_dilated(
        x_ncl, p["w"], window_strides=(stride,), padding=[(padding, padding)],
        dimension_numbers=("NCH", "OIH", "NCH"))
    y = y + p["b"][None, :, None]
    y = (y - p["mean"][None, :, None]) / jnp.sqrt(p["var"][None, :, None] + eps)
    y = y * p["gamma"][None, :, None] + p["beta"][None, :, None]
    return jnp.maximum(y, 0.0)


def ref_encoder(x_ncl, params, *, stride, padding):
    x = x_ncl
    for p in params:
        x = ref_block(x, p, stride=stride, padding=padding)
    return x


if __name__ == "__main__":
    # Encoder(in_channels=4, out_channels=[8, 16, 32], kernel_size=3, stride=1, padding=1, ...)
    in_channels = 4
    out_channels = [8, 16, 32]
    kernel_size = 3
    stride = 1
    padding = 1

    N, L = 2, 16
    root = jax.random.PRNGKey(0)
    kx, kp = jax.random.split(root)
    x = jax.random.normal(kx, (N, in_channels, L), jnp.float32)   # PyTorch NCL input

    chans = [in_channels] + out_channels
    pkeys = jax.random.split(kp, 3)
    params = [make_block_params(pkeys[i], chans[i], chans[i + 1], kernel_size)
              for i in range(3)]

    fwd = jax.jit(functools.partial(encoder_forward, stride=stride, padding=padding))
    out = jax.block_until_ready(fwd(x, params))

    ref = ref_encoder(x, params, stride=stride, padding=padding)
    assert out.shape == (N, out_channels[-1], L), out.shape
    max_err = float(jnp.max(jnp.abs(out - ref)))
    # bf16 MXU operands (f32 accumulate/epilogue) -> relaxed tolerance vs f32 reference.
    assert jnp.allclose(out, ref, atol=5e-2, rtol=5e-2), max_err

    print("KERNEL_OK")
</pallas_src>

<mosaic_0001>
module attributes {stable_mosaic.version = 11 : i64} {
  func.func @_encoder_kernel(%arg0: i32, %arg1: memref<1x4x16xf32, #tpu.memory_space<vmem>>, %arg2: memref<3x8x4xbf16, #tpu.memory_space<vmem>>, %arg3: memref<8x2xf32, #tpu.memory_space<vmem>>, %arg4: memref<3x16x8xbf16, #tpu.memory_space<vmem>>, %arg5: memref<16x2xf32, #tpu.memory_space<vmem>>, %arg6: memref<3x32x16xbf16, #tpu.memory_space<vmem>>, %arg7: memref<32x2xf32, #tpu.memory_space<vmem>>, %arg8: memref<1x32x16xf32, #tpu.memory_space<vmem>>, %arg9: memref<4x18xf32, #tpu.memory_space<vmem>>, %arg10: memref<8x18xf32, #tpu.memory_space<vmem>>, %arg11: memref<16x18xf32, #tpu.memory_space<vmem>>) attributes {dimension_semantics = [#tpu.dimension_semantics<parallel>], iteration_bounds = array<i64: 2>, scalar_prefetch = 0 : i64, scratch_operands = 3 : i64, tpu.core_type = #tpu.core_type<tc>, window_params = [{transform_indices = @transform_0, window_bounds = array<i64: 1, 4, 16>}, {pipeline_mode = #tpu.pipeline_mode<synchronous>, transform_indices = @transform_1, window_bounds = array<i64: 3, 8, 4>}, {pipeline_mode = #tpu.pipeline_mode<synchronous>, transform_indices = @transform_2, window_bounds = array<i64: 8, 2>}, {pipeline_mode = #tpu.pipeline_mode<synchronous>, transform_indices = @transform_3, window_bounds = array<i64: 3, 16, 8>}, {pipeline_mode = #tpu.pipeline_mode<synchronous>, transform_indices = @transform_4, window_bounds = array<i64: 16, 2>}, {pipeline_mode = #tpu.pipeline_mode<synchronous>, transform_indices = @transform_5, window_bounds = array<i64: 3, 32, 16>}, {pipeline_mode = #tpu.pipeline_mode<synchronous>, transform_indices = @transform_6, window_bounds = array<i64: 32, 2>}, {transform_indices = @transform_7, window_bounds = array<i64: 1, 32, 16>}]} {
    %c0 = arith.constant 0 : index
    %c0_0 = arith.constant 0 : index
    %c0_1 = arith.constant 0 : index
    %0 = vector.load %arg1[%c0, %c0_0, %c0_1] : memref<1x4x16xf32, #tpu.memory_space<vmem>>, vector<1x4x16xf32>
    %1 = vector.shape_cast %0 : vector<1x4x16xf32> to vector<4x16xf32>
    %cst = arith.constant 0.000000e+00 : f32
    %2 = vector.broadcast %cst : f32 to vector<4x1xf32>
    %c0_2 = arith.constant 0 : index
    %c0_3 = arith.constant 0 : index
    %3 = vector.load %arg9[%c0_2, %c0_3] : memref<4x18xf32, #tpu.memory_space<vmem>>, vector<4x1xf32>
    tpu.vector_store %arg9[%c0_2, %c0_3], %2 {strides = array<i32>} : memref<4x18xf32, #tpu.memory_space<vmem>>, vector<4x1xf32>,
    %c0_4 = arith.constant 0 : index
    %c17 = arith.constant 17 : index
    %4 = vector.load %arg9[%c0_4, %c17] : memref<4x18xf32, #tpu.memory_space<vmem>>, vector<4x1xf32>
    tpu.vector_store %arg9[%c0_4, %c17], %2 {strides = array<i32>} : memref<4x18xf32, #tpu.memory_space<vmem>>, vector<4x1xf32>,
    %c0_5 = arith.constant 0 : index
    %c1 = arith.constant 1 : index
    %5 = vector.load %arg9[%c0_5, %c1] : memref<4x18xf32, #tpu.memory_space<vmem>>, vector<4x16xf32>
    tpu.vector_store %arg9[%c0_5, %c1], %1 {strides = array<i32>} : memref<4x18xf32, #tpu.memory_space<vmem>>, vector<4x16xf32>,
    %cst_6 = arith.constant 0.000000e+00 : f32
    %6 = vector.broadcast %cst_6 : f32 to vector<8x16xf32>
    %c0_7 = arith.constant 0 : index
    %c0_8 = arith.constant 0 : index
    %7 = vector.load %arg9[%c0_7, %c0_8] : memref<4x18xf32, #tpu.memory_space<vmem>>, vector<4x16xf32>
    %8 = arith.truncf %7 : vector<4x16xf32> to vector<4x16xbf16>
    %c0_9 = arith.constant 0 : index
    %c0_10 = arith.constant 0 : index
    %c0_11 = arith.constant 0 : index
    %9 = vector.load %arg2[%c0_9, %c0_10, %c0_11] : memref<3x8x4xbf16, #tpu.memory_space<vmem>>, vector<1x8x4xbf16>
    %10 = vector.shape_cast %9 : vector<1x8x4xbf16> to vector<8x4xbf16>
    %cst_12 = arith.constant dense<0.000000e+00> : vector<8x16xf32>
    %11 = tpu.matmul %10, %8, %cst_12 {dimension_numbers = #tpu.dot_dimension_numbers<[1], [0], [0], [1], [0, 0, 1, 1], [], []>} : vector<8x4xbf16>, vector<4x16xbf16>, vector<8x16xf32> -> vector<8x16xf32>
    %12 = arith.addf %6, %11 : vector<8x16xf32>
    %c0_13 = arith.constant 0 : index
    %c1_14 = arith.constant 1 : index
    %13 = vector.load %arg9[%c0_13, %c1_14] : memref<4x18xf32, #tpu.memory_space<vmem>>, vector<4x16xf32>
    %14 = arith.truncf %13 : vector<4x16xf32> to vector<4x16xbf16>
    %c1_15 = arith.constant 1 : index
    %c0_16 = arith.constant 0 : index
    %c0_17 = arith.constant 0 : index
    %15 = vector.load %arg2[%c1_15, %c0_16, %c0_17] : memref<3x8x4xbf16, #tpu.memory_space<vmem>>, vector<1x8x4xbf16>
    %16 = vector.shape_cast %15 : vector<1x8x4xbf16> to vector<8x4xbf16>
    %cst_18 = arith.constant dense<0.000000e+00> : vector<8x16xf32>
    %17 = tpu.matmul %16, %14, %cst_18 {dimension_numbers = #tpu.dot_dimension_numbers<[1], [0], [0], [1], [0, 0, 1, 1], [], []>} : vector<8x4xbf16>, vector<4x16xbf16>, vector<8x16xf32> -> vector<8x16xf32>
    %18 = arith.addf %12, %17 : vector<8x16xf32>
    %c0_19 = arith.constant 0 : index
    %c2 = arith.constant 2 : index
    %19 = vector.load %arg9[%c0_19, %c2] : memref<4x18xf32, #tpu.memory_space<vmem>>, vector<4x16xf32>
    %20 = arith.truncf %19 : vector<4x16xf32> to vector<4x16xbf16>
    %c2_20 = arith.constant 2 : index
    %c0_21 = arith.constant 0 : index
    %c0_22 = arith.constant 0 : index
    %21 = vector.load %arg2[%c2_20, %c0_21, %c0_22] : memref<3x8x4xbf16, #tpu.memory_space<vmem>>, vector<1x8x4xbf16>
    %22 = vector.shape_cast %21 : vector<1x8x4xbf16> to vector<8x4xbf16>
    %cst_23 = arith.constant dense<0.000000e+00> : vector<8x16xf32>
    %23 = tpu.matmul %22, %20, %cst_23 {dimension_numbers = #tpu.dot_dimension_numbers<[1], [0], [0], [1], [0, 0, 1, 1], [], []>} : vector<8x4xbf16>, vector<4x16xbf16>, vector<8x16xf32> -> vector<8x16xf32>
    %24 = arith.addf %18, %23 : vector<8x16xf32>
    %c0_24 = arith.constant 0 : index
    %c0_25 = arith.constant 0 : index
    %25 = vector.load %arg3[%c0_24, %c0_25] : memref<8x2xf32, #tpu.memory_space<vmem>>, vector<8x1xf32>
    %26 = vector.broadcast %25 : vector<8x1xf32> to vector<8x16xf32>
    %27 = arith.mulf %24, %26 : vector<8x16xf32>
    %c0_26 = arith.constant 0 : index
    %c1_27 = arith.constant 1 : index
    %28 = vector.load %arg3[%c0_26, %c1_27] : memref<8x2xf32, #tpu.memory_space<vmem>>, vector<8x1xf32>
    %29 = vector.broadcast %28 : vector<8x1xf32> to vector<8x16xf32>
    %30 = arith.addf %27, %29 : vector<8x16xf32>
    %cst_28 = arith.constant 0.000000e+00 : f32
    %31 = vector.broadcast %cst_28 : f32 to vector<8x16xf32>
    %32 = arith.maximumf %30, %31 : vector<8x16xf32>
    %cst_29 = arith.constant 0.000000e+00 : f32
    %33 = vector.broadcast %cst_29 : f32 to vector<8x1xf32>
    %c0_30 = arith.constant 0 : index
    %c0_31 = arith.constant 0 : index
    %34 = vector.load %arg10[%c0_30, %c0_31] : memref<8x18xf32, #tpu.memory_space<vmem>>, vector<8x1xf32>
    tpu.vector_store %arg10[%c0_30, %c0_31], %33 {strides = array<i32>} : memref<8x18xf32, #tpu.memory_space<vmem>>, vector<8x1xf32>,
    %c0_32 = arith.constant 0 : index
    %c17_33 = arith.constant 17 : index
    %35 = vector.load %arg10[%c0_32, %c17_33] : memref<8x18xf32, #tpu.memory_space<vmem>>, vector<8x1xf32>
    tpu.vector_store %arg10[%c0_32, %c17_33], %33 {strides = array<i32>} : memref<8x18xf32, #tpu.memory_space<vmem>>, vector<8x1xf32>,
    %c0_34 = arith.constant 0 : index
    %c1_35 = arith.constant 1 : index
    %36 = vector.load %arg10[%c0_34, %c1_35] : memref<8x18xf32, #tpu.memory_space<vmem>>, vector<8x16xf32>
    tpu.vector_store %arg10[%c0_34, %c1_35], %32 {strides = array<i32>} : memref<8x18xf32, #tpu.memory_space<vmem>>, vector<8x16xf32>,
    %cst_36 = arith.constant 0.000000e+00 : f32
    %37 = vector.broadcast %cst_36 : f32 to vector<16x16xf32>
    %c0_37 = arith.constant 0 : index
    %c0_38 = arith.constant 0 : index
    %38 = vector.load %arg10[%c0_37, %c0_38] : memref<8x18xf32, #tpu.memory_space<vmem>>, vector<8x16xf32>
    %39 = arith.truncf %38 : vector<8x16xf32> to vector<8x16xbf16>
    %c0_39 = arith.constant 0 : index
    %c0_40 = arith.constant 0 : index
    %c0_41 = arith.constant 0 : index
    %40 = vector.load %arg4[%c0_39, %c0_40, %c0_41] : memref<3x16x8xbf16, #tpu.memory_space<vmem>>, vector<1x16x8xbf16>
    %41 = vector.shape_cast %40 : vector<1x16x8xbf16> to vector<16x8xbf16>
    %cst_42 = arith.constant dense<0.000000e+00> : vector<16x16xf32>
    %42 = tpu.matmul %41, %39, %cst_42 {dimension_numbers = #tpu.dot_dimension_numbers<[1], [0], [0], [1], [0, 0, 1, 1], [], []>} : vector<16x8xbf16>, vector<8x16xbf16>, vector<16x16xf32> -> vector<16x16xf32>
    %43 = arith.addf %37, %42 : vector<16x16xf32>
    %c0_43 = arith.constant 0 : index
    %c1_44 = arith.constant 1 : index
    %44 = vector.load %arg10[%c0_43, %c1_44] : memref<8x18xf32, #tpu.memory_space<vmem>>, vector<8x16xf32>
    %45 = arith.truncf %44 : vector<8x16xf32> to vector<8x16xbf16>
    %c1_45 = arith.constant 1 : index
    %c0_46 = arith.constant 0 : index
    %c0_47 = arith.constant 0 : index
    %46 = vector.load %arg4[%c1_45, %c0_46, %c0_47] : memref<3x16x8xbf16, #tpu.memory_space<vmem>>, vector<1x16x8xbf16>
    %47 = vector.shape_cast %46 : vector<1x16x8xbf16> to vector<16x8xbf16>
    %cst_48 = arith.constant dense<0.000000e+00> : vector<16x16xf32>
    %48 = tpu.matmul %47, %45, %cst_48 {dimension_numbers = #tpu.dot_dimension_numbers<[1], [0], [0], [1], [0, 0, 1, 1], [], []>} : vector<16x8xbf16>, vector<8x16xbf16>, vector<16x16xf32> -> vector<16x16xf32>
    %49 = arith.addf %43, %48 : vector<16x16xf32>
    %c0_49 = arith.constant 0 : index
    %c2_50 = arith.constant 2 : index
    %50 = vector.load %arg10[%c0_49, %c2_50] : memref<8x18xf32, #tpu.memory_space<vmem>>, vector<8x16xf32>
    %51 = arith.truncf %50 : vector<8x16xf32> to vector<8x16xbf16>
    %c2_51 = arith.constant 2 : index
    %c0_52 = arith.constant 0 : index
    %c0_53 = arith.constant 0 : index
    %52 = vector.load %arg4[%c2_51, %c0_52, %c0_53] : memref<3x16x8xbf16, #tpu.memory_space<vmem>>, vector<1x16x8xbf16>
    %53 = vector.shape_cast %52 : vector<1x16x8xbf16> to vector<16x8xbf16>
    %cst_54 = arith.constant dense<0.000000e+00> : vector<16x16xf32>
    %54 = tpu.matmul %53, %51, %cst_54 {dimension_numbers = #tpu.dot_dimension_numbers<[1], [0], [0], [1], [0, 0, 1, 1], [], []>} : vector<16x8xbf16>, vector<8x16xbf16>, vector<16x16xf32> -> vector<16x16xf32>
    %55 = arith.addf %49, %54 : vector<16x16xf32>
    %c0_55 = arith.constant 0 : index
    %c0_56 = arith.constant 0 : index
    %56 = vector.load %arg5[%c0_55, %c0_56] : memref<16x2xf32, #tpu.memory_space<vmem>>, vector<16x1xf32>
    %57 = vector.broadcast %56 : vector<16x1xf32> to vector<16x16xf32>
    %58 = arith.mulf %55, %57 : vector<16x16xf32>
    %c0_57 = arith.constant 0 : index
    %c1_58 = arith.constant 1 : index
    %59 = vector.load %arg5[%c0_57, %c1_58] : memref<16x2xf32, #tpu.memory_space<vmem>>, vector<16x1xf32>
    %60 = vector.broadcast %59 : vector<16x1xf32> to vector<16x16xf32>
    %61 = arith.addf %58, %60 : vector<16x16xf32>
    %cst_59 = arith.constant 0.000000e+00 : f32
    %62 = vector.broadcast %cst_59 : f32 to vector<16x16xf32>
    %63 = arith.maximumf %61, %62 : vector<16x16xf32>
    %cst_60 = arith.constant 0.000000e+00 : f32
    %64 = vector.broadcast %cst_60 : f32 to vector<16x1xf32>
    %c0_61 = arith.constant 0 : index
    %c0_62 = arith.constant 0 : index
    %65 = vector.load %arg11[%c0_61, %c0_62] : memref<16x18xf32, #tpu.memory_space<vmem>>, vector<16x1xf32>
    tpu.vector_store %arg11[%c0_61, %c0_62], %64 {strides = array<i32>} : memref<16x18xf32, #tpu.memory_space<vmem>>, vector<16x1xf32>,
    %c0_63 = arith.constant 0 : index
    %c17_64 = arith.constant 17 : index
    %66 = vector.load %arg11[%c0_63, %c17_64] : memref<16x18xf32, #tpu.memory_space<vmem>>, vector<16x1xf32>
    tpu.vector_store %arg11[%c0_63, %c17_64], %64 {strides = array<i32>} : memref<16x18xf32, #tpu.memory_space<vmem>>, vector<16x1xf32>,
    %c0_65 = arith.constant 0 : index
    %c1_66 = arith.constant 1 : index
    %67 = vector.load %arg11[%c0_65, %c1_66] : memref<16x18xf32, #tpu.memory_space<vmem>>, vector<16x16xf32>
    tpu.vector_store %arg11[%c0_65, %c1_66], %63 {strides = array<i32>} : memref<16x18xf32, #tpu.memory_space<vmem>>, vector<16x16xf32>,
    %cst_67 = arith.constant 0.000000e+00 : f32
    %68 = vector.broadcast %cst_67 : f32 to vector<32x16xf32>
    %c0_68 = arith.constant 0 : index
    %c0_69 = arith.constant 0 : index
    %69 = vector.load %arg11[%c0_68, %c0_69] : memref<16x18xf32, #tpu.memory_space<vmem>>, vector<16x16xf32>
    %70 = arith.truncf %69 : vector<16x16xf32> to vector<16x16xbf16>
    %c0_70 = arith.constant 0 : index
    %c0_71 = arith.constant 0 : index
    %c0_72 = arith.constant 0 : index
    %71 = vector.load %arg6[%c0_70, %c0_71, %c0_72] : memref<3x32x16xbf16, #tpu.memory_space<vmem>>, vector<1x32x16xbf16>
    %72 = vector.shape_cast %71 : vector<1x32x16xbf16> to vector<32x16xbf16>
    %cst_73 = arith.constant dense<0.000000e+00> : vector<32x16xf32>
    %73 = tpu.matmul %72, %70, %cst_73 {dimension_numbers = #tpu.dot_dimension_numbers<[1], [0], [0], [1], [0, 0, 1, 1], [], []>} : vector<32x16xbf16>, vector<16x16xbf16>, vector<32x16xf32> -> vector<32x16xf32>
    %74 = arith.addf %68, %73 : vector<32x16xf32>
    %c0_74 = arith.constant 0 : index
    %c1_75 = arith.constant 1 : index
    %75 = vector.load %arg11[%c0_74, %c1_75] : memref<16x18xf32, #tpu.memory_space<vmem>>, vector<16x16xf32>
    %76 = arith.truncf %75 : vector<16x16xf32> to vector<16x16xbf16>
    %c1_76 = arith.constant 1 : index
    %c0_77 = arith.constant 0 : index
    %c0_78 = arith.constant 0 : index
    %77 = vector.load %arg6[%c1_76, %c0_77, %c0_78] : memref<3x32x16xbf16, #tpu.memory_space<vmem>>, vector<1x32x16xbf16>
    %78 = vector.shape_cast %77 : vector<1x32x16xbf16> to vector<32x16xbf16>
    %cst_79 = arith.constant dense<0.000000e+00> : vector<32x16xf32>
    %79 = tpu.matmul %78, %76, %cst_79 {dimension_numbers = #tpu.dot_dimension_numbers<[1], [0], [0], [1], [0, 0, 1, 1], [], []>} : vector<32x16xbf16>, vector<16x16xbf16>, vector<32x16xf32> -> vector<32x16xf32>
    %80 = arith.addf %74, %79 : vector<32x16xf32>
    %c0_80 = arith.constant 0 : index
    %c2_81 = arith.constant 2 : index
    %81 = vector.load %arg11[%c0_80, %c2_81] : memref<16x18xf32, #tpu.memory_space<vmem>>, vector<16x16xf32>
    %82 = arith.truncf %81 : vector<16x16xf32> to vector<16x16xbf16>
    %c2_82 = arith.constant 2 : index
    %c0_83 = arith.constant 0 : index
    %c0_84 = arith.constant 0 : index
    %83 = vector.load %arg6[%c2_82, %c0_83, %c0_84] : memref<3x32x16xbf16, #tpu.memory_space<vmem>>, vector<1x32x16xbf16>
    %84 = vector.shape_cast %83 : vector<1x32x16xbf16> to vector<32x16xbf16>
    %cst_85 = arith.constant dense<0.000000e+00> : vector<32x16xf32>
    %85 = tpu.matmul %84, %82, %cst_85 {dimension_numbers = #tpu.dot_dimension_numbers<[1], [0], [0], [1], [0, 0, 1, 1], [], []>} : vector<32x16xbf16>, vector<16x16xbf16>, vector<32x16xf32> -> vector<32x16xf32>
    %86 = arith.addf %80, %85 : vector<32x16xf32>
    %c0_86 = arith.constant 0 : index
    %c0_87 = arith.constant 0 : index
    %87 = vector.load %arg7[%c0_86, %c0_87] : memref<32x2xf32, #tpu.memory_space<vmem>>, vector<32x1xf32>
    %88 = vector.broadcast %87 : vector<32x1xf32> to vector<32x16xf32>
    %89 = arith.mulf %86, %88 : vector<32x16xf32>
    %c0_88 = arith.constant 0 : index
    %c1_89 = arith.constant 1 : index
    %90 = vector.load %arg7[%c0_88, %c1_89] : memref<32x2xf32, #tpu.memory_space<vmem>>, vector<32x1xf32>
    %91 = vector.broadcast %90 : vector<32x1xf32> to vector<32x16xf32>
    %92 = arith.addf %89, %91 : vector<32x16xf32>
    %cst_90 = arith.constant 0.000000e+00 : f32
    %93 = vector.broadcast %cst_90 : f32 to vector<32x16xf32>
    %94 = arith.maximumf %92, %93 : vector<32x16xf32>
    %c0_91 = arith.constant 0 : index
    %c0_92 = arith.constant 0 : index
    %c0_93 = arith.constant 0 : index
    %95 = vector.load %arg8[%c0_91, %c0_92, %c0_93] : memref<1x32x16xf32, #tpu.memory_space<vmem>>, vector<1x32x16xf32>
    %96 = vector.shape_cast %95 : vector<1x32x16xf32> to vector<32x16xf32>
    %97 = vector.shape_cast %94 : vector<32x16xf32> to vector<1x32x16xf32>
    tpu.vector_store %arg8[%c0_91, %c0_92, %c0_93], %97 {strides = array<i32>} : memref<1x32x16xf32, #tpu.memory_space<vmem>>, vector<1x32x16xf32>,
    return
  }
  func.func @transform_0(%arg0: i32) -> (i32, i32, i32) {
    %c0_i32 = arith.constant 0 : i32
    %c0_i32_0 = arith.constant 0 : i32
    %c0_i32_1 = arith.constant 0 : i32
    return %arg0, %c0_i32, %c0_i32_0 : i32, i32, i32
  }
  func.func @transform_1(%arg0: i32) -> (i32, i32, i32) {
    %c0_i32 = arith.constant 0 : i32
    %c0_i32_0 = arith.constant 0 : i32
    %c0_i32_1 = arith.constant 0 : i32
    %c0_i32_2 = arith.constant 0 : i32
    return %c0_i32, %c0_i32_0, %c0_i32_1 : i32, i32, i32
  }
  func.func @transform_2(%arg0: i32) -> (i32, i32) {
    %c0_i32 = arith.constant 0 : i32
    %c0_i32_0 = arith.constant 0 : i32
    %c0_i32_1 = arith.constant 0 : i32
    return %c0_i32, %c0_i32_0 : i32, i32
  }
  func.func @transform_3(%arg0: i32) -> (i32, i32, i32) {
    %c0_i32 = arith.constant 0 : i32
    %c0_i32_0 = arith.constant 0 : i32
    %c0_i32_1 = arith.constant 0 : i32
    %c0_i32_2 = arith.constant 0 : i32
    return %c0_i32, %c0_i32_0, %c0_i32_1 : i32, i32, i32
  }
  func.func @transform_4(%arg0: i32) -> (i32, i32) {
    %c0_i32 = arith.constant 0 : i32
    %c0_i32_0 = arith.constant 0 : i32
    %c0_i32_1 = arith.constant 0 : i32
    return %c0_i32, %c0_i32_0 : i32, i32
  }
  func.func @transform_5(%arg0: i32) -> (i32, i32, i32) {
    %c0_i32 = arith.constant 0 : i32
    %c0_i32_0 = arith.constant 0 : i32
    %c0_i32_1 = arith.constant 0 : i32
    %c0_i32_2 = arith.constant 0 : i32
    return %c0_i32, %c0_i32_0, %c0_i32_1 : i32, i32, i32
  }
  func.func @transform_6(%arg0: i32) -> (i32, i32) {
    %c0_i32 = arith.constant 0 : i32
    %c0_i32_0 = arith.constant 0 : i32
    %c0_i32_1 = arith.constant 0 : i32
    return %c0_i32, %c0_i32_0 : i32, i32
  }
  func.func @transform_7(%arg0: i32) -> (i32, i32, i32) {
    %c0_i32 = arith.constant 0 : i32
    %c0_i32_0 = arith.constant 0 : i32
    %c0_i32_1 = arith.constant 0 : i32
    return %arg0, %c0_i32, %c0_i32_0 : i32, i32, i32
  }
}

</mosaic_0001>

<bundles_post_ra>
// kernel: encoder_forward.1
= control target key start
LH: loop header
LB: loop body
LE: loop exit
PB: predicated region body
PF: predicated region fallthrough
CT: control target
= control target key end

     0   :  { %s1221_s24 = smov 0   ;;  %s1367_s0 = inlined_call_operand.vmem [shape: f32[2,4,16], index: 0, kind: input, shape index: {}]   ;;  %s1368_s1 = inlined_call_operand.vmem [shape: bf16[3,8,4], index: 1, kind: input, shape index: {}]   ;;  %s1369_s2 = inlined_call_operand.vmem [shape: f32[8,2], index: 2, kind: input, shape index: {}]   ;;  %s1370_s3 = inlined_call_operand.vmem [shape: bf16[3,16,8], index: 3, kind: input, shape index: {}]   ;;  %s1371_s4 = inlined_call_operand.vmem [shape: f32[16,2], index: 4, kind: input, shape index: {}]   ;;  %s1372_s5 = inlined_call_operand.vmem [shape: bf16[3,32,16], index: 5, kind: input, shape index: {}]   ;;  %s1373_s6 = inlined_call_operand.vmem [shape: f32[32,2], index: 6, kind: input, shape index: {}]   ;;  %s1374_s7 = inlined_call_operand.vmem [shape: f32[2,32,16], index: 7, kind: output, shape index: {}]  }
   0x1 LB: > { %s1014_s25 = sadd.s32 4294967295, %s1172_s24   ;;  %p1018_p0 = scmp.ge.s32.totalorder %s1172_s24, 1  ;;  %s1172_s24 = sphi %s1221_s24, %s17_s24  }
   0x2   : > { %p236_p1 = scmp.lt.s32.totalorder %s1172_s24, 3 }
   0x4   : > { %p237_p2 = pnand %p1018_p0, %p236_p1 }
   0x5   : > { %p267_p3 = scmp.lt.s32.totalorder (!%p237_p2), %s1014_s25, 1  ;;  %s1175_s30 = smov (!%p237_p2), 1  }
   0x6   : > { %240 = sbr.rel (%p237_p2) target bundleno = 1385 (0x569), region = 48  ;;  %s1177_s8 = smov (!%p237_p2), 126  }
   0x7   : > { %s1178_s9 = smov (!%p237_p2), 127  }
   0xb   : > { %vm278_vm0 = vcmask 3072   ;;  %vm280_vm1 = vcmask 142472   ;;  %v1174_v0 = vmov 0.0   ;;  %s1376_s25 = smov (!%p267_p3, %s1014_s25), 1  ;;  %vm286_vm2 = vcmask 134152   ;;  %v441_v8 = vld [vmem:[%s1369_s2] sm:$0xff] }
   0xc   : > { %279 = vst.msk [vmem:[#allocation2] sm:$0xf] %vm278_vm0, %v1174_v0  ;;  %1087 = vmatprep.subr.bf16.mxu1 %v1174_v0  ;;  %1081 = vmatprep.subr.bf16.mxu0 %v1174_v0  ;;  %s1019_s26 = sshll.u32 %s1376_s25, 2  ;;  %vm1176_vm3 = vmmov 0   ;;  %vm300_vm4 = vcmask 1041408   ;;  %vm296_vm5 = vcmask 31744  }
   0xd   : > { %281 = vst.msk [vmem:[#allocation2] sm:$0xf] %vm280_vm1, %v1174_v0  ;;  %s270_s29 = scalar_lea.vmem %s1367_s0, %s1019_s26  ;;  %1083 = vmatprep.mubr.msk.bf16.mxu0 %vm1176_vm3, %v1174_v0  ;;  %1089 = vmatprep.mubr.msk.bf16.mxu1 %vm1176_vm3, %v1174_v0  ;;  %v290_v6 = vld [vmem:[%s1368_s1] sm:$0xf]  ;;  %v1179_v7 = vmov 0   ;;  %v1180_v9 = vmov 1  }
   0xe   : > { %v277_v1 = vld [vmem:[%s270_s29] sm:$0xf]  ;;  %1150 = vset.pattern.permute.xlu1 %v1179_v7  ;;  %1151 = vset.pattern.permute.xlu0 %v1180_v9  ;;  %v1022_v13 = vld [vmem:[%s1368_s1 + $0x4] sm:$0xf]  ;;  %v1025_v15 = vld [vmem:[%s1368_s1 + $0x8] sm:$0xf] }
   0xf   : > { %283 = vrot.lane.b32.xlu0 %v277_v1, %s1175_s30  ;;  %vm454_vm6 = vcmask 7168   ;;  %vm456_vm7 = vcmask 146568   ;;  %vm462_vm8 = vcmask 138248   ;;  %vm483_vm9 = vcmask 1043456   ;;  %v1158_v39 = vld [vmem:[%s1370_s3] sm:$0xff]   ;;  %v640_v41 = vld [vmem:[%s1371_s4 + $0x8] sm:$0xff] }
  0x10   : > { %455 = vst.msk [vmem:[#allocation3] sm:$0xff] %vm454_vm6, %v1174_v0  ;;  %665 = vst.msk [vmem:[#allocation4] sm:$0xff] %vm454_vm6, %v1174_v0  ;;  %v639_v40 = vld [vmem:[%s1371_s4] sm:$0xff]  ;;  %vm479_vm10 = vcmask 64512   ;;  %v1157_v44 = vld [vmem:[%s1370_s3 + $0x8] sm:$0xff]   ;;  %vm705_vm11 = vcmask 130048  }
  0x11   : > { %666 = vst.msk [vmem:[#allocation4 + $0x8] sm:$0xff] %vm454_vm6, %v1174_v0  ;;  %v1159_v47 = vld [vmem:[%s1370_s3 + $0x10] sm:$0xff]   ;;  %s1059_s29 = sshll.u32 %s1376_s25, 5 }
  0x12   : > { %457 = vst.msk [vmem:[#allocation3] sm:$0xff] %vm456_vm7, %v1174_v0  ;;  %667 = vst.msk [vmem:[#allocation4] sm:$0xff] %vm456_vm7, %v1174_v0  ;;  %s275_s12 = scalar_lea.vmem %s1374_s7, %s1059_s29 }
  0x13   : > { %668 = vst.msk [vmem:[#allocation4 + $0x8] sm:$0xff] %vm456_vm7, %v1174_v0 }
  0x81   : > { %v284_v2 = vpop.permute.xlu0 %283 }
  0x82   : > { %287 = vst.msk [vmem:[#allocation2] sm:$0xf] %vm286_vm2, %v284_v2 }
  0x89   : > { %v288_v3 = vld [vmem:[#allocation2] sm:$0xf] }
  0x8a   : > { %v289_v4 = vpack.c.bf16 %v288_v3, %v288_v3 }
  0x8c   : > { %392 = vrot.lane.b32.xlu1 %v289_v4, %s1177_s8  ;;  %294 = vrot.lane.b32.xlu0 %v289_v4, %s1178_s9  ;;  %v348_v5 = vsel %vm300_vm4, %v289_v4, 0 }
  0x8d   : > { %1088 = vmatpush3.bf16.msra.mxu1 %v348_v5 }
  0x8e   : > { %1099 = vmatprep.subr.bf16.mxu1 %v1174_v0 }
  0x90   : > { %1090 = vmatmul.mubr.msk.bf16.vlgmr.msra.gmra.mxu1 %vm296_vm5, %v290_v6  ;;  %444 = vperm.xlu1 %1150, %v441_v8  }
  0x91   : > { %449 = vperm.xlu0 %1151, %v441_v8   ;;  %1101 = vmatprep.mubr.msk.bf16.mxu1 %vm1176_vm3, %v1174_v0 }
  0x95   : > { %1152 = vset.pattern.permute.xlu0 %v1179_v7 }
  0xfe   : > { %v295_v10 = vpop.permute.xlu0 %294  ;;  %v393_v12 = vpop.permute.xlu1 %392 }
  0xff   : > { %v302_v11 = vsel %vm300_vm4, %v295_v10, 0  ;;  %v398_v14 = vsel %vm300_vm4, %v393_v12, 0 }
 0x100   : > { %1082 = vmatpush3.bf16.msra.mxu0 %v302_v11 }
 0x101   : > { %1093 = vmatprep.subr.bf16.mxu0 %v1174_v0 }
 0x103   : > { %1084 = vmatmul.mubr.msk.bf16.vlgmr.msra.gmra.mxu0 %vm296_vm5, %v1022_v13  ;;  %v1160_v13 = vld [vmem:[%s1372_s5 + $0x10] sm:$0xff]  }
 0x104   : > { %1094 = vmatpush3.bf16.msra.mxu0 %v398_v14  ;;  %1095 = vmatprep.mubr.msk.bf16.mxu0 %vm1176_vm3, %v1174_v0  ;;  %v1161_v14 = vld [vmem:[%s1372_s5] sm:$0xff]  }
 0x105   : > { %1105 = vmatprep.subr.bf16.mxu0 %v1174_v0 }
 0x10b   : > { %1096 = vmatmul.mubr.msk.bf16.vlgmr.msra.gmra.mxu0 %vm296_vm5, %v1025_v15  ;;  %v445_v26 = vpop.permute.xlu1 %444 }
 0x10c   : > { %1107 = vmatprep.mubr.msk.bf16.mxu0 %vm1176_vm3, %v1174_v0  ;;  %v450_v29 = vpop.permute.xlu0 %449 }
 0x150   : > { %v384_v16 = vpop.f32.mrf.mxu1 }
 0x152   : > { %v1091_v17 = vpop.f32.mrf.mxu1 }
 0x154   : > { %v387_v18 = vpop.f32.mrf.mxu1 }
 0x155   : > { %v903_v18 = vld [vmem:[%s1373_s6] sm:$0xff] }
 0x156   : > { %v1092_v19 = vpop.f32.mrf.mxu1 }
 0x157   : > { %v1163_v19 = vld [vmem:[%s1372_s5 + $0x8] sm:$0xff]  }
 0x1c3   : > { %v338_v20 = vpop.f32.mrf.mxu0 }
 0x1c4   : > { %v385_v24 = vadd.f32 %v384_v16, %v338_v20  ;;  %v904_v20 = vld [vmem:[%s1373_s6 + $0x8] sm:$0xff] }
 0x1c5   : > { %v1085_v21 = vpop.f32.mrf.mxu0 }
 0x1c6   : > { %v905_v21 = vld [vmem:[%s1373_s6 + $0x10] sm:$0xff] }
 0x1c7   : > { %v341_v22 = vpop.f32.mrf.mxu0 }
 0x1c8   : > { %v906_v22 = vld [vmem:[%s1373_s6 + $0x18] sm:$0xff] }
 0x1c9   : > { %v1086_v23 = vpop.f32.mrf.mxu0 }
 0x1cb   : > { %v434_v25 = vpop.f32.mrf.mxu0 }
 0x1cc   : > { %v440_v27 = vadd.f32 %v434_v25, %v385_v24  ;;  %v1162_v24 = vld [vmem:[%s1372_s5 + $0x18] sm:$0xff]  }
 0x1cd   : > { %v1097_v28 = vpop.f32.mrf.mxu0 }
 0x1ce   : > { %v447_v30 = vmul.f32 %v445_v26, %v440_v27  ;;  %v1164_v26 = vld [vmem:[%s1372_s5 + $0x20] sm:$0xff]  }
 0x1cf   : > { %v437_v31 = vpop.f32.mrf.mxu0 }
 0x1d0   : > { %v452_v32 = vadd.f32 %v450_v29, %v447_v30 }
 0x1d1   : > { %v1098_v33 = vpop.f32.mrf.mxu0 }
 0x1d2   : > { %v453_v34 = vmax.f32 %v452_v32, 0.0 }
 0x1d4   : > { %459 = vrot.lane.b32.xlu1 %v453_v34, %s1175_s30 }
 0x246   : > { %v460_v35 = vpop.permute.xlu1 %459 }
 0x247   : > { %463 = vst.msk [vmem:[#allocation3] sm:$0xff] %vm462_vm8, %v460_v35 }
 0x24e   : > { %v464_v36 = vld [vmem:[#allocation3] sm:$0xff] }
 0x24f   : > { %v465_v37 = vpack.c.bf16 %v464_v36, %v464_v36 }
 0x251   : > { %588 = vrot.lane.b32.xlu0 %v465_v37, %s1177_s8  ;;  %477 = vrot.lane.b32.xlu1 %v465_v37, %s1178_s9  ;;  %v537_v38 = vsel %vm483_vm9, %v465_v37, 0 }
 0x252   : > { %1106 = vmatpush3.bf16.msra.mxu0 %v537_v38 }
 0x255   : > { %643 = vperm.xlu1 %1150, %v639_v40   ;;  %1108 = vmatmul.mubr.msk.bf16.vlgmr.msra.gmra.mxu0 %vm479_vm10, %v1158_v39 }
 0x256   : > { %648 = vperm.xlu0 %1152, %v640_v41   ;;  %1119 = vmatprep.mubr.msk.bf16.mxu0 %vm705_vm11, %v1160_v13 }
 0x259   : > { %1153 = vset.pattern.permute.xlu1 %v1180_v9 }
 0x25a   : > { %654 = vperm.xlu1 %1153, %v639_v40  }
 0x25e   : > { %658 = vperm.xlu1 %1153, %v640_v41  }
 0x262   : > { %1154 = vset.pattern.permute.xlu1 %v1179_v7 }
 0x2c3   : > { %v478_v42 = vpop.permute.xlu1 %477  ;;  %v589_v45 = vpop.permute.xlu0 %588 }
 0x2c4   : > { %v485_v43 = vsel %vm483_vm9, %v478_v42, 0  ;;  %v594_v46 = vsel %vm483_vm9, %v589_v45, 0 }
 0x2c5   : > { %1100 = vmatpush3.bf16.msra.mxu1 %v485_v43 }
 0x2c6   : > { %1111 = vmatprep.subr.bf16.mxu1 %v1174_v0 }
 0x2c8   : > { %1102 = vmatmul.mubr.msk.bf16.vlgmr.msra.gmra.mxu1 %vm479_vm10, %v1157_v44 }
 0x2c9   : > { %1112 = vmatpush3.bf16.msra.mxu1 %v594_v46  ;;  %1113 = vmatprep.mubr.msk.bf16.mxu1 %vm1176_vm3, %v1174_v0 }
 0x2d0   : > { %1114 = vmatmul.mubr.msk.bf16.vlgmr.msra.gmra.mxu1 %vm479_vm10, %v1159_v47  ;;  %v644_v55 = vpop.permute.xlu1 %643 }
 0x2d1   : > { %v649_v1 = vpop.permute.xlu0 %648  ;;  %1125 = vmatprep.mubr.msk.bf16.mxu1 %vm705_vm11, %v1161_v14 }
 0x2d5   : > { %v655_v60 = vpop.permute.xlu1 %654 }
 0x2d9   : > { %v659_v7 = vpop.permute.xlu1 %658 }
 0x315   : > { %v573_v48 = vpop.f32.mrf.mxu0 }
 0x317   : > { %v1109_v49 = vpop.f32.mrf.mxu0 }
 0x319   : > { %v576_v50 = vpop.f32.mrf.mxu0 }
 0x31b   : > { %v1110_v51 = vpop.f32.mrf.mxu0 }
 0x388   : > { %v521_v52 = vpop.f32.mrf.mxu1 }
 0x389   : > { %v574_v57 = vadd.f32 %v573_v48, %v521_v52 }
 0x38a   : > { %v1103_v53 = vpop.f32.mrf.mxu1 }
 0x38c   : > { %v524_v54 = vpop.f32.mrf.mxu1 }
 0x38d   : > { %v577_v62 = vadd.f32 %v576_v50, %v524_v54 }
 0x38e   : > { %v1104_v56 = vpop.f32.mrf.mxu1 }
 0x390   : > { %v630_v58 = vpop.f32.mrf.mxu1 }
 0x391   : > { %v637_v59 = vadd.f32 %v630_v58, %v574_v57 }
 0x392   : > { %v1115_v61 = vpop.f32.mrf.mxu1 }
 0x393   : > { %v651_v63 = vmul.f32 %v644_v55, %v637_v59 }
 0x394   : > { %v633_v0 = vpop.f32.mrf.mxu1 }
 0x395   : > { %v638_v2 = vadd.f32 %v633_v0, %v577_v62  ;;  %v661_v3 = vadd.f32 %v655_v60, %v651_v63 }
 0x396   : > { %v1116_v4 = vpop.f32.mrf.mxu1 }
 0x397   : > { %v652_v5 = vmul.f32 %v649_v1, %v638_v2  ;;  %v663_v6 = vmax.f32 %v661_v3, 0.0 }
 0x399   : > { %v662_v8 = vadd.f32 %v659_v7, %v652_v5  ;;  %671 = vrot.lane.b32.xlu0 %v663_v6, %s1175_s30 }
 0x39b   : > { %v664_v10 = vmax.f32 %v662_v8, 0.0 }
 0x39d   : > { %673 = vrot.lane.b32.xlu1 %v664_v10, %s1175_s30 }
 0x40b   : > { %v672_v11 = vpop.permute.xlu0 %671 }
 0x40c   : > { %677 = vst.msk [vmem:[#allocation4] sm:$0xff] %vm462_vm8, %v672_v11 }
 0x40f   : > { %v674_v12 = vpop.permute.xlu1 %673 }
 0x410   : > { %678 = vst.msk [vmem:[#allocation4 + $0x8] sm:$0xff] %vm462_vm8, %v674_v12 }
 0x413   : > { %v679_v15 = vld [vmem:[#allocation4] sm:$0xff] }
 0x417   : > { %v680_v16 = vld [vmem:[#allocation4 + $0x8] sm:$0xff] }
 0x418   : > { %v681_v17 = vpack.c.bf16 %v680_v16, %v679_v15 }
 0x41a   : > { %841 = vrot.lane.b32.xlu1 %v681_v17, %s1177_s8  ;;  %702 = vrot.lane.b32.xlu0 %v681_v17, %s1178_s9 }
 0x41b   : > { %1123 = vmatprep.subr.bf16.mxu1 %v681_v17 }
 0x41c   : > { %1124 = vmatpush3.bf16.msra.mxu1 %v681_v17 }
 0x41e   : > { %909 = vperm.xlu0 %1152, %v903_v18   ;;  %914 = vperm.xlu1 %1154, %v904_v20  }
 0x41f   : > { %1126 = vmatmul.mubr.msk.bf16.vlgmr.msra.gmra.mxu1 %vm705_vm11, %v1163_v19 }
 0x422   : > { %919 = vperm.xlu0 %1152, %v905_v21   ;;  %924 = vperm.xlu1 %1154, %v906_v22  }
 0x426   : > { %1156 = vset.pattern.permute.xlu1 %v1180_v9  ;;  %1155 = vset.pattern.permute.xlu0 %v1180_v9  ;;  %v1165_v9 = vld [vmem:[%s1372_s5 + $0x28] sm:$0xff]  }
 0x427   : > { %936 = vperm.xlu1 %1156, %v904_v20   ;;  %932 = vperm.xlu0 %1155, %v903_v18  }
 0x42b   : > { %940 = vperm.xlu1 %1156, %v905_v21   ;;  %944 = vperm.xlu0 %1155, %v906_v22  }
 0x48c   : > { %v703_v23 = vpop.permute.xlu0 %702  ;;  %v842_v25 = vpop.permute.xlu1 %841 }
 0x48d   : > { %1117 = vmatprep.subr.bf16.mxu0 %v703_v23 }
 0x48e   : > { %1118 = vmatpush3.bf16.msra.mxu0 %v703_v23 }
 0x48f   : > { %1129 = vmatprep.subr.bf16.mxu0 %v842_v25 }
 0x491   : > { %1120 = vmatmul.mubr.msk.bf16.vlgmr.msra.gmra.mxu0 %vm705_vm11, %v1162_v24 }
 0x492   : > { %1130 = vmatpush3.bf16.msra.mxu0 %v842_v25  ;;  %1131 = vmatprep.mubr.msk.bf16.mxu0 %vm705_vm11, %v1164_v26 }
 0x499   : > { %1132 = vmatmul.mubr.msk.bf16.vlgmr.msra.gmra.mxu0 %vm705_vm11, %v1165_v9  ;;  %v915_v27 = vpop.permute.xlu1 %914  ;;  %v910_v30 = vpop.permute.xlu0 %909 }
 0x49d   : > { %v925_v28 = vpop.permute.xlu1 %924  ;;  %v920_v36 = vpop.permute.xlu0 %919 }
 0x4a2   : > { %v937_v34 = vpop.permute.xlu1 %936  ;;  %v933_v44 = vpop.permute.xlu0 %932 }
 0x4a6   : > { %v941_v43 = vpop.permute.xlu1 %940  ;;  %v945_v60 = vpop.permute.xlu0 %944 }
 0x4df   : > { %v1127_v29 = vpop.f32.mrf.mxu1 }
 0x4e1   : > { %v811_v33 = vpop.f32.mrf.mxu1 }
 0x4e3   : > { %v1128_v37 = vpop.f32.mrf.mxu1 }
 0x4e5   : > { %v814_v45 = vpop.f32.mrf.mxu1 }
 0x551   : > { %v1121_v31 = vpop.f32.mrf.mxu0 }
 0x552   : > { %v820_v39 = vadd.f32 %v1127_v29, %v1121_v31 }
 0x553   : > { %v746_v32 = vpop.f32.mrf.mxu0 }
 0x554   : > { %v812_v41 = vadd.f32 %v811_v33, %v746_v32 }
 0x555   : > { %v1122_v35 = vpop.f32.mrf.mxu0 }
 0x556   : > { %v823_v47 = vadd.f32 %v1128_v37, %v1122_v35 }
 0x557   : > { %v749_v38 = vpop.f32.mrf.mxu0 }
 0x558   : > { %v815_v51 = vadd.f32 %v814_v45, %v749_v38 }
 0x559   : > { %v1133_v40 = vpop.f32.mrf.mxu0 }
 0x55a   : > { %v901_v42 = vadd.f32 %v1133_v40, %v820_v39 }
 0x55b   : > { %v884_v46 = vpop.f32.mrf.mxu0 }
 0x55c   : > { %v899_v48 = vadd.f32 %v884_v46, %v812_v41  ;;  %v929_v49 = vmul.f32 %v920_v36, %v901_v42 }
 0x55d   : > { %v1134_v50 = vpop.f32.mrf.mxu0 }
 0x55e   : > { %v949_v52 = vadd.f32 %v941_v43, %v929_v49  ;;  %v902_v53 = vadd.f32 %v1134_v50, %v823_v47  ;;  %v927_v54 = vmul.f32 %v910_v30, %v899_v48 }
 0x55f   : > { %v887_v55 = vpop.f32.mrf.mxu0 }
 0x560   : > { %v953_v56 = vmax.f32 %v949_v52, 0.0  ;;  %v947_v57 = vadd.f32 %v933_v44, %v927_v54  ;;  %v900_v58 = vadd.f32 %v887_v55, %v815_v51  ;;  %v930_v59 = vmul.f32 %v925_v28, %v902_v53 }
 0x562   : > { %957 = vst.msk [vmem:[%s275_s12 + $0x10] sm:$0xff] %vm705_vm11, %v953_v56  ;;  %v951_v61 = vmax.f32 %v947_v57, 0.0  ;;  %v928_v62 = vmul.f32 %v915_v27, %v900_v58  ;;  %v950_v63 = vadd.f32 %v945_v60, %v930_v59 }
 0x564   : > { %955 = vst.msk [vmem:[%s275_s12] sm:$0xff] %vm705_vm11, %v951_v61  ;;  %v948_v0 = vadd.f32 %v937_v34, %v928_v62  ;;  %v954_v1 = vmax.f32 %v950_v63, 0.0 }
 0x566   : > { %v952_v2 = vmax.f32 %v948_v0, 0.0  ;;  %958 = vst.msk [vmem:[%s275_s12 + $0x18] sm:$0xff] %vm705_vm11, %v954_v1 }
 0x568   : > { %956 = vst.msk [vmem:[%s275_s12 + $0x8] sm:$0xff] %vm705_vm11, %v952_v2 }
 0x569 PF: > { %s17_s24 = sadd.s32 1, %s1172_s24  }
 0x56a   : > { %p14_p4 = scmp.ge.s32.totalorder %s17_s24, 4  }
 0x56c   :  { %16 = sbr.rel (!%p14_p4) target bundleno = 1 (0x1), region = 84 }

</bundles_post_ra>
